<compile_context>
chip_gen: v7x
topology: tpu7x:2x2x1
jax: 0.10.0
libtpu: 0.0.40
codegen_flags: <defaults>
</compile_context>

<pallas_src>
import math

import jax
import jax.numpy as jnp
from jax.experimental import pallas as pl
from jax.experimental.pallas import tpu as pltpu


def _round_up(x, m):
    return (x + m - 1) // m * m


def _cdiv(a, b):
    return -(-a // b)


# ---------------------------------------------------------------------------
# Kernels
# ---------------------------------------------------------------------------

def _linear_kernel_f32out(x_ref, w_ref, b_ref, o_ref):
    # f32 output: accumulate directly into the resident output block.
    # x_ref: (tm, tk)  w_ref: (tk, tn)  b_ref: (1, tn)  o_ref: (tm, tn) f32
    k = pl.program_id(2)

    @pl.when(k == 0)
    def _():
        o_ref[...] = jnp.broadcast_to(
            b_ref[...].astype(o_ref.dtype), o_ref.shape
        )

    o_ref[...] += jnp.dot(
        x_ref[...], w_ref[...], preferred_element_type=jnp.float32
    )


def _linear_kernel_acc(x_ref, w_ref, b_ref, o_ref, acc_ref):
    # Low-precision output: f32 VMEM accumulator, single bias add + cast at the end.
    k = pl.program_id(2)

    @pl.when(k == 0)
    def _():
        acc_ref[...] = jnp.zeros_like(acc_ref)

    acc_ref[...] += jnp.dot(
        x_ref[...], w_ref[...], preferred_element_type=jnp.float32
    )

    @pl.when(k == pl.num_programs(2) - 1)
    def _():
        o_ref[...] = (acc_ref[...] + b_ref[...].astype(jnp.float32)).astype(
            o_ref.dtype
        )


# ---------------------------------------------------------------------------
# Generation-aware tile / VMEM defaults
# ---------------------------------------------------------------------------

def _chip_defaults():
    """(tm, tn, tk, vmem_budget_bytes, n_tensorcores) tuned per TPU generation."""
    kind = ""
    try:
        kind = jax.devices()[0].device_kind.lower()
    except Exception:
        pass
    vmem_cap = None
    try:
        vmem_cap = int(pltpu.get_tpu_info().vmem_capacity_bytes)
    except Exception:
        vmem_cap = None

    mib = 1024 * 1024
    if "v7" in kind:
        # 64 MiB VMEM per TC, 2 TCs, ridge ~311 FLOP/byte (bf16): 768-wide tiles,
        # leave headroom below the physical 64 MiB.
        tm, tn, tk, n_cores = 768, 768, 1024, 2
        cap = vmem_cap if vmem_cap else 64 * mib
        budget = min(int(0.80 * cap), 52 * mib)
    elif "v6" in kind:
        # 128 MiB VMEM, ridge ~655 FLOP/byte: go to 1024-wide output tiles.
        tm, tn, tk, n_cores = 1024, 1024, 1024, 1
        cap = vmem_cap if vmem_cap else 128 * mib
        budget = int(0.78 * cap)
    elif "v5" in kind or "v4" in kind:
        # Ridge ~240 FLOP/byte: 512 tiles already reach it; long tk amortizes
        # per-step overhead without extra vreg/VMEM pressure.
        tm, tn, tk, n_cores = 512, 512, 2048, 1
        cap = vmem_cap if vmem_cap else 128 * mib
        budget = int(0.75 * cap)
    else:
        tm, tn, tk, n_cores = 512, 512, 1024, 1
        cap = vmem_cap if vmem_cap else 64 * mib
        budget = min(int(0.75 * cap), 48 * mib)
    budget = max(budget, 32 * mib)
    return tm, tn, tk, budget, n_cores


# ---------------------------------------------------------------------------
# Wrapper
# ---------------------------------------------------------------------------

def linear_pallas(x, weight_t, bias, *, tm=None, tn=None, tk=None,
                  compute_dtype=None):
    """y = x @ weight_t + bias, computed in a Pallas TPU kernel.

    x:        [..., K]
    weight_t: [K, N]   (transpose of PyTorch's weight)
    bias:     [N]
    compute_dtype: optional dtype (e.g. jnp.bfloat16) for the dot operands;
                   accumulation stays f32 and the output keeps x.dtype.
    returns:  [..., N]
    """
    orig_shape = x.shape
    K = orig_shape[-1]
    Kw, N = weight_t.shape
    assert Kw == K, f"weight_t has K={Kw}, expected {K}"
    out_dtype = x.dtype

    x2d = x.reshape(-1, K)
    M = x2d.shape[0]

    # Optional low-precision MXU operands (halves operand HBM traffic).
    xc = x2d if compute_dtype is None else x2d.astype(compute_dtype)
    wc = weight_t if compute_dtype is None else weight_t.astype(compute_dtype)

    dtm, dtn, dtk, vmem_budget, n_cores = _chip_defaults()
    tm = dtm if tm is None else tm
    tn = dtn if tn is None else tn
    tk = dtk if tk is None else tk

    # Dtype-aware sublane rounding for the activation/output row axis:
    # 8 sublanes for 4-byte, 16 for 2-byte, 32 for 1-byte dtypes.
    x_bytes = jnp.dtype(xc.dtype).itemsize
    sub = max(8, 32 // x_bytes)

    # Clamp tiles for small problems while keeping TPU layout alignment:
    #   tm: sublane axis of x / out  -> multiple of `sub`
    #   tn: lane axis of w / out     -> multiple of 128 (lane-dense stores)
    #   tk: lane axis of x, sublane of w -> multiple of 128
    tm = min(tm, _round_up(M, sub))
    tn = min(tn, _round_up(N, 128))
    tk = min(tk, _round_up(K, 128))

    # On 2-TensorCore chips make sure the "parallel" M/N axes have >= 2 blocks
    # so both cores get work (split N first: keeps 128-lane alignment).
    if n_cores >= 2 and _cdiv(M, tm) * _cdiv(N, tn) < 2:
        if N > 128:
            tn = max(128, _round_up(_cdiv(N, 2), 128))
        elif M > sub:
            tm = max(sub, _round_up(_cdiv(M, 2), sub))

    # Per-operand-dtype VMEM footprint (double-buffered ins/outs + f32 acc).
    w_bytes = jnp.dtype(wc.dtype).itemsize
    o_bytes = jnp.dtype(out_dtype).itemsize
    b_bytes = jnp.dtype(bias.dtype).itemsize
    out_is_f32 = jnp.dtype(out_dtype) == jnp.dtype(jnp.float32)
    acc_bytes = 0 if out_is_f32 else 4

    def _footprint(tm_, tn_, tk_):
        return (2 * (tm_ * tk_ * x_bytes + tk_ * tn_ * w_bytes
                     + tm_ * tn_ * o_bytes)
                + tm_ * tn_ * acc_bytes + 2 * tn_ * b_bytes)

    # Shrink-to-fit (only triggers for oversized user-supplied tiles).
    while _footprint(tm, tn, tk) > vmem_budget:
        if tk > 512 and tk >= max(tm, tn):
            tk = _round_up(tk // 2, 128)
        elif tm >= tn and tm > sub:
            tm = _round_up(max(sub, tm // 2), sub)
        elif tn > 128:
            tn = _round_up(max(128, tn // 2), 128)
        elif tk > 128:
            tk = _round_up(tk // 2, 128)
        else:
            break

    # Only K needs zero-padding (for reduction correctness); ragged M/N are
    # handled by the grid (partial blocks + masked stores), no activation copy.
    Kp = _round_up(K, tk)
    if Kp != K:
        xc = jnp.pad(xc, ((0, 0), (0, Kp - K)))
        wc = jnp.pad(wc, ((0, Kp - K), (0, 0)))
    b2d = bias.reshape(1, N)

    grid = (_cdiv(M, tm), _cdiv(N, tn), Kp // tk)

    est = _footprint(tm, tn, tk)
    vmem_limit = min(vmem_budget,
                     max(16 * 1024 * 1024, int(1.5 * est) + (4 << 20)))

    if out_is_f32:
        kernel = _linear_kernel_f32out
        scratch = []
    else:
        kernel = _linear_kernel_acc
        scratch = [pltpu.VMEM((tm, tn), jnp.float32)]

    out = pl.pallas_call(
        kernel,
        out_shape=jax.ShapeDtypeStruct((M, N), out_dtype),
        grid_spec=pltpu.PrefetchScalarGridSpec(
            num_scalar_prefetch=0,
            grid=grid,
            in_specs=[
                pl.BlockSpec((tm, tk), lambda i, j, k: (i, k)),  # activation tile
                pl.BlockSpec((tk, tn), lambda i, j, k: (k, j)),  # weight tile
                pl.BlockSpec((1, tn), lambda i, j, k: (0, j)),   # bias tile
            ],
            out_specs=pl.BlockSpec((tm, tn), lambda i, j, k: (i, j)),
            scratch_shapes=scratch,
        ),
        compiler_params=pltpu.CompilerParams(
            dimension_semantics=("parallel", "parallel", "arbitrary"),
            vmem_limit_bytes=int(vmem_limit),
        ),
    )(xc, wc, b2d)

    return out.reshape(*orig_shape[:-1], N)


# ---------------------------------------------------------------------------
# Parameter init mirroring the module's __init__ (xavier weight, default bias)
# ---------------------------------------------------------------------------

def init_linear_params(key, in_features, out_features, dtype=jnp.float32):
    """weight: xavier (glorot) uniform, stored transposed as (in, out);
    bias: PyTorch nn.Linear default uniform(-1/sqrt(fan_in), 1/sqrt(fan_in))."""
    kw, kb = jax.random.split(key)
    limit_w = math.sqrt(6.0 / (in_features + out_features))
    weight_t = jax.random.uniform(
        kw, (in_features, out_features), dtype, minval=-limit_w, maxval=limit_w
    )
    limit_b = 1.0 / math.sqrt(in_features)
    bias = jax.random.uniform(
        kb, (out_features,), dtype, minval=-limit_b, maxval=limit_b
    )
    return weight_t, bias


if __name__ == "__main__":
    key = jax.random.PRNGKey(0)
    k_x, k_p = jax.random.split(key)

    batch, seq, in_features, out_features = 2, 8, 32, 48
    x = jax.random.normal(k_x, (batch, seq, in_features), jnp.float32)
    weight_t, bias = init_linear_params(k_p, in_features, out_features)

    y = jax.block_until_ready(linear_pallas(x, weight_t, bias))
    y_ref = x @ weight_t + bias
    assert y.shape == (batch, seq, out_features)
    assert jnp.allclose(y, y_ref, atol=1e-5, rtol=1e-5)

    # Ragged / larger shapes: exercises K padding + partial M/N blocks.
    k_x2, k_p2 = jax.random.split(k_p)
    x2 = jax.random.normal(k_x2, (3, 37, 200), jnp.float32)
    w2, b2 = init_linear_params(k_p2, 200, 300)
    y2 = jax.block_until_ready(linear_pallas(x2, w2, b2))
    y2_ref = x2 @ w2 + b2
    assert jnp.allclose(y2, y2_ref, atol=1e-4, rtol=1e-4)

    # Optional bf16-operand fast path (f32 accumulation) — looser tolerance.
    y3 = jax.block_until_ready(
        linear_pallas(x2, w2, b2, compute_dtype=jnp.bfloat16)
    )
    assert jnp.allclose(y3, y2_ref, atol=5e-2, rtol=5e-2)

    print("KERNEL_OK")
</pallas_src>

<mosaic_0001>
module attributes {stable_mosaic.version = 11 : i64} {
  func.func @_linear_kernel_f32out(%arg0: i32, %arg1: i32, %arg2: i32, %arg3: memref<16x128xf32, #tpu.memory_space<vmem>>, %arg4: memref<128x128xf32, #tpu.memory_space<vmem>>, %arg5: memref<1x128xf32, #tpu.memory_space<vmem>>, %arg6: memref<16x128xf32, #tpu.memory_space<vmem>>) attributes {dimension_semantics = [#tpu.dimension_semantics<parallel>, #tpu.dimension_semantics<parallel>, #tpu.dimension_semantics<arbitrary>], iteration_bounds = array<i64: 1, 1, 1>, scalar_prefetch = 0 : i64, scratch_operands = 0 : i64, tpu.core_type = #tpu.core_type<tc>, window_params = [{transform_indices = @transform_0, window_bounds = array<i64: 16, 128>}, {transform_indices = @transform_1, window_bounds = array<i64: 128, 128>}, {transform_indices = @transform_2, window_bounds = array<i64: 1, 128>}, {transform_indices = @transform_3, window_bounds = array<i64: 16, 128>}]} {
    %c0_i32 = arith.constant 0 : i32
    %0 = arith.cmpi eq, %arg2, %c0_i32 : i32
    %1 = arith.extui %0 : i1 to i32
    %c0_i32_0 = arith.constant 0 : i32
    %2 = arith.cmpi ne, %1, %c0_i32_0 : i32
    scf.if %2 {
      %c0_8 = arith.constant 0 : index
      %c0_9 = arith.constant 0 : index
      %9 = vector.load %arg5[%c0_8, %c0_9] : memref<1x128xf32, #tpu.memory_space<vmem>>, vector<1x128xf32>
      %10 = vector.shape_cast %9 : vector<1x128xf32> to vector<1x128xf32>
      %11 = vector.broadcast %10 : vector<1x128xf32> to vector<16x128xf32>
      %c0_10 = arith.constant 0 : index
      %c0_11 = arith.constant 0 : index
      %12 = vector.load %arg6[%c0_10, %c0_11] : memref<16x128xf32, #tpu.memory_space<vmem>>, vector<16x128xf32>
      tpu.vector_store %arg6[%c0_10, %c0_11], %11 {strides = array<i32>} : memref<16x128xf32, #tpu.memory_space<vmem>>, vector<16x128xf32>,
    } else {
    }
    %c0 = arith.constant 0 : index
    %c0_1 = arith.constant 0 : index
    %3 = vector.load %arg6[%c0, %c0_1] : memref<16x128xf32, #tpu.memory_space<vmem>>, vector<16x128xf32>
    %c0_2 = arith.constant 0 : index
    %c0_3 = arith.constant 0 : index
    %4 = vector.load %arg3[%c0_2, %c0_3] : memref<16x128xf32, #tpu.memory_space<vmem>>, vector<16x128xf32>
    %c0_4 = arith.constant 0 : index
    %c0_5 = arith.constant 0 : index
    %5 = vector.load %arg4[%c0_4, %c0_5] : memref<128x128xf32, #tpu.memory_space<vmem>>, vector<128x128xf32>
    %cst = arith.constant dense<0.000000e+00> : vector<16x128xf32>
    %6 = tpu.matmul %4, %5, %cst {dimension_numbers = #tpu.dot_dimension_numbers<[1], [0], [0], [1], [0, 0, 1, 1], [], []>} : vector<16x128xf32>, vector<128x128xf32>, vector<16x128xf32> -> vector<16x128xf32>
    %7 = arith.addf %3, %6 : vector<16x128xf32>
    %c0_6 = arith.constant 0 : index
    %c0_7 = arith.constant 0 : index
    %8 = vector.load %arg6[%c0_6, %c0_7] : memref<16x128xf32, #tpu.memory_space<vmem>>, vector<16x128xf32>
    tpu.vector_store %arg6[%c0_6, %c0_7], %7 {strides = array<i32>} : memref<16x128xf32, #tpu.memory_space<vmem>>, vector<16x128xf32>,
    return
  }
  func.func @transform_0(%arg0: i32, %arg1: i32, %arg2: i32) -> (i32, i32) {
    %c0_i32 = arith.constant 0 : i32
    return %arg0, %arg2 : i32, i32
  }
  func.func @transform_1(%arg0: i32, %arg1: i32, %arg2: i32) -> (i32, i32) {
    %c0_i32 = arith.constant 0 : i32
    return %arg2, %arg1 : i32, i32
  }
  func.func @transform_2(%arg0: i32, %arg1: i32, %arg2: i32) -> (i32, i32) {
    %c0_i32 = arith.constant 0 : i32
    %c0_i32_0 = arith.constant 0 : i32
    return %c0_i32, %arg1 : i32, i32
  }
  func.func @transform_3(%arg0: i32, %arg1: i32, %arg2: i32) -> (i32, i32) {
    %c0_i32 = arith.constant 0 : i32
    return %arg0, %arg1 : i32, i32
  }
}

</mosaic_0001>

<bundles_post_ra>
// kernel: tpu_custom_call.1
= control target key start
LH: loop header
LB: loop body
LE: loop exit
PB: predicated region body
PF: predicated region fallthrough
CT: control target
= control target key end

     0   :  { %s348_s0 = inlined_call_operand.vmem [shape: f32[16,128], index: 0, kind: input, shape index: {}]   ;;  %s349_s1 = inlined_call_operand.vmem [shape: f32[128,48], index: 1, kind: input, shape index: {}]   ;;  %s350_s2 = inlined_call_operand.vmem [shape: f32[1,48], index: 2, kind: input, shape index: {}]   ;;  %s351_s3 = inlined_call_operand.hbm [shape: f32[16,48], index: 3, kind: output, shape index: {}]  }
   0x1   :  { %v32_v0 = vld [vmem:[%s349_s1] sm:$0xff]  ;;  %v33_v1 = vld [vmem:[%s349_s1 + $0x8] sm:$0xff]  ;;  %v34_v2 = vld [vmem:[%s349_s1 + $0x10] sm:$0xff] }
   0x2   :  { %v197_v3 = vpack.c.bf16 %v33_v1, %v32_v0  ;;  %v35_v4 = vld [vmem:[%s349_s1 + $0x18] sm:$0xff]  ;;  %v36_v6 = vld [vmem:[%s349_s1 + $0x20] sm:$0xff]  ;;  %v37_v7 = vld [vmem:[%s349_s1 + $0x28] sm:$0xff] }
   0x3   :  { %v201_v5 = vpack.c.bf16 %v35_v4, %v34_v2  ;;  %v205_v8 = vpack.c.bf16 %v37_v7, %v36_v6  ;;  %v30_v9 = vld [vmem:[%s348_s0] sm:$0xff]  ;;  %v38_v10 = vld [vmem:[%s349_s1 + $0x30] sm:$0xff]  ;;  %v39_v11 = vld [vmem:[%s349_s1 + $0x38] sm:$0xff] }
   0x4   :  { %198 = vmatprep.subr.bf16.mxu0 %v197_v3  ;;  %194 = vmatprep.mubr.f32.mxu0 %v30_v9 }
   0x5   :  { %200 = vmatpush3.bf16.msra.mxu0 %v197_v3 }
   0x6   :  { %202 = vmatprep.subr.bf16.mxu0 %v201_v5 }
   0x7   :  { %8 = vsyncpa [#allocation3], 0  ;;  %v209_v12 = vpack.c.bf16 %v39_v11, %v38_v10  ;;  %v40_v13 = vld [vmem:[%s349_s1 + $0x40] sm:$0xff]  ;;  %v41_v14 = vld [vmem:[%s349_s1 + $0x48] sm:$0xff]  ;;  %s256_s23 = smov [#allocation2]  }
   0x8   :  { %v213_v15 = vpack.c.bf16 %v41_v14, %v40_v13  ;;  %v42_v16 = vld [vmem:[%s349_s1 + $0x50] sm:$0xff]  ;;  %v43_v17 = vld [vmem:[%s349_s1 + $0x58] sm:$0xff]  ;;  %v44_v19 = vld [vmem:[%s349_s1 + $0x60] sm:$0xff]  ;;  %s132_s24 = sshll.u32 %s256_s23, 4  ;;  %s133_s24 = int_to_ptr.vmem [resolvable:$true] %s132_s24 }
   0x9   :  { %204 = vmatpush3.bf16.msra.mxu0 %v201_v5  ;;  %v217_v18 = vpack.c.bf16 %v43_v17, %v42_v16  ;;  %v45_v20 = vld [vmem:[%s349_s1 + $0x68] sm:$0xff]  ;;  %v46_v22 = vld [vmem:[%s349_s1 + $0x70] sm:$0xff]  ;;  %v47_v23 = vld [vmem:[%s349_s1 + $0x78] sm:$0xff]  ;;  %s232_s1 = scalar_lea.vmem %s133_s24, 256  ;;  %p237_p1 = scmp.lt.s32.totalorder %s133_s24, %s133_s24 }
   0xa   :  { %206 = vmatprep.subr.bf16.mxu0 %v205_v8  ;;  %v221_v21 = vpack.c.bf16 %v45_v20, %v44_v19  ;;  %v225_v24 = vpack.c.bf16 %v47_v23, %v46_v22  ;;  %v31_v25 = vld [vmem:[%s348_s0 + $0x8] sm:$0xff]  ;;  %v143_v26 = vld [vmem:[%s350_s2] ss:$0 sm:$0xff]  ;;  %p233_p0 = scmp.ne.s32.totalorder %s133_s24, %s232_s1  ;;  %p238_p2 = scmp.lt.s32.totalorder %s232_s1, %s232_s1 }
   0xc   :  { %p239_p3 = por %p238_p2, %p237_p1 }
   0xd   :  { %208 = vmatpush3.bf16.msra.mxu0 %v205_v8 }
   0xe   :  { %210 = vmatprep.subr.bf16.mxu0 %v209_v12  ;;  %p240_p4 = pnand %p239_p3, %p233_p0 }
  0x11   :  { %212 = vmatpush3.bf16.msra.mxu0 %v209_v12 }
  0x12   :  { %214 = vmatprep.subr.bf16.mxu0 %v213_v15 }
  0x15   :  { %216 = vmatpush3.bf16.msra.mxu0 %v213_v15 }
  0x16   :  { %218 = vmatprep.subr.bf16.mxu0 %v217_v18 }
  0x19   :  { %220 = vmatpush3.bf16.msra.mxu0 %v217_v18 }
  0x1a   :  { %222 = vmatprep.subr.bf16.mxu0 %v221_v21 }
  0x1d   :  { %224 = vmatpush3.bf16.msra.mxu0 %v221_v21 }
  0x1e   :  { %226 = vmatprep.subr.bf16.mxu0 %v225_v24 }
  0x21   :  { %228 = vmatpush3.bf16.msra.mxu0 %v225_v24 }
  0x24   :  { %195 = vmatmul.mubr.f32.vlgmr.msra.gmra.mrb[0].mxu0 %v31_v25 }
  0xf7   :  { %v196_v27 = vpop.f32.mrb[0].mxu0 }
  0xf8   :  { %v124_v28 = vadd.f32 %v196_v27, %v143_v26  ;;  %v114_v29 = vpop.f32.mrb[1].mxu0 }
  0xf9   :  { %v123_v30 = vadd.f32 %v143_v26, %v114_v29 }
  0xfa   :  { %126 = vst [vmem:[#allocation2 + $0x8] sm:$0xff] %v124_v28 }
  0xfb   :  { %125 = vst [vmem:[#allocation2] sm:$0xff] %v123_v30 }
  0xfc   :  { %243 = shalt.err (!%p240_p4)
}
  0xfd   :  { %s244_s2 = scalar_lea.hbm %s351_s3, 256 }
  0xfe   :  { %p245_p5 = scmp.ne.s32.totalorder %s351_s3, %s244_s2  ;;  %p248_p6 = scmp.lt.u32.totalorder %s244_s2, %s351_s3 }
 0x100   :  { %p250_p7 = pnand %p248_p6, %p245_p5 }
 0x102   :  { %253 = shalt.err (!%p250_p7)
}
 0x103   :  { %s257_s30 = smov 128   ;;  %s258_s4 = smov 8  }
 0x104   :  { %138 = dma.vmem_to_hbm [thread:$0]  %s133_s24, 256, %s351_s3, [#allocation3], %s257_s30, %s257_s30, %s258_s4  }
 0x105   :  { %254 = dma.done.wait [#allocation3], 256  }
 0x106   :  { %255 = vsyncadd [#allocation3], 4294967040 }
 0x107   :  { %142 = vsyncpa [#allocation3], 1 }

</bundles_post_ra>
